<compile_context>
chip_gen: v5e
topology: v5e:2x2
jax: 0.10.0
libtpu: 0.0.40
codegen_flags: <defaults>
</compile_context>

<pallas_src>
import jax
import jax.numpy as jnp
from jax.experimental import pallas as pl
from jax.experimental.pallas import tpu as pltpu


def _round_up(a, m):
    return -(-a // m) * m


def _make_dnn_kernel(n_layers, output, out_sizes, total_out):
    """Builds a kernel closure for a fixed layer count / output head."""
    seg_ranges = []
    off = 0
    for sz in out_sizes:
        seg_ranges.append((off, sz))
        off += sz

    def kernel(x_ref, *refs):
        # refs = (w0, b0, w1, b1, ..., w_{L-1}, b_{L-1}, out_ref)
        param_refs = refs[: 2 * n_layers]
        out_ref = refs[2 * n_layers]

        # x may be bf16 (when weights are bf16) or f32; the dot always
        # accumulates in f32, preserving the `x = x.float()` semantics.
        h = x_ref[...]
        for i in range(n_layers):
            w = param_refs[2 * i][...]
            b = param_refs[2 * i + 1][...].astype(jnp.float32)
            lhs = h if h.dtype == w.dtype else h.astype(w.dtype)
            h = jnp.dot(lhs, w, preferred_element_type=jnp.float32) + b
            if i < n_layers - 1:
                h = jnp.maximum(h, 0.0)  # ReLU on hidden layers only

        if output == "linear":
            out_ref[...] = h
        else:
            # Segmented softmax with a SINGLE exp pass over the lane-dense
            # tile.  Column masks are disjoint and cover all of total_out.
            col = jax.lax.broadcasted_iota(jnp.int32, (1, total_out), 1)
            masks = []
            row_max = jnp.zeros_like(h)
            for off_, sz in seg_ranges:
                m = (col >= off_) & (col < off_ + sz)
                masks.append(m)
                seg_max = jnp.max(
                    jnp.where(m, h, -jnp.inf), axis=-1, keepdims=True
                )
                row_max = row_max + jnp.where(m, seg_max, 0.0)
            e = jnp.exp(h - row_max)  # one EUP pass; exponent always <= 0
            denom = jnp.zeros_like(h)
            for m in masks:
                seg_sum = jnp.sum(
                    jnp.where(m, e, 0.0), axis=-1, keepdims=True
                )
                denom = denom + jnp.where(m, seg_sum, 0.0)
            out_ref[...] = e * pl.reciprocal(denom, approx=True)

    return kernel


def dnn_forward(x, weights, biases, *, output, out_sizes):
    """JAX wrapper reproducing DNN.forward.

    x:       [B, in_size] (or [in_size] like the torch module)
    weights: list of [d_in, d_out] arrays (f32 or bf16)
    biases:  list of [1, d_out] arrays (f32)
    output:  'linear' -> [B, sum(out_sizes)] array
             'softmax' -> list of [B, sz] softmax-ed arrays
    """
    assert output in ("linear", "softmax")
    n_layers = len(weights)

    x = jnp.asarray(x)
    squeeze = x.ndim == 1
    if squeeze:
        x = x[None, :]

    # bf16 weights: feed bf16 x (halves input DMA bytes); otherwise f32.
    if weights[0].dtype == jnp.bfloat16:
        x = x.astype(jnp.bfloat16)
    else:
        x = x.astype(jnp.float32)

    B, in_size = x.shape
    total_out = weights[-1].shape[1]
    assert total_out == sum(out_sizes)
    max_width = max([in_size] + [int(w.shape[1]) for w in weights])

    # ---- batch-tile selection -------------------------------------------
    # Size the tile by bytes moved per grid step (~2 MiB target), cap by an
    # activation working-set budget (f32 h + bf16 MXU copy ~ 6 B/elem) and by
    # 8192 rows, leave >= 2 grid iterations for large B (v7x dual TC), then
    # MXU-align (256 rows for large batches, multiple-of-8 floor for tiny B).
    align = 256 if B >= 256 else 8
    row_bytes = in_size * x.dtype.itemsize + total_out * 4
    tb = max(1, (2 * 1024 * 1024) // row_bytes)
    tb = min(tb, max(align, (4 * 1024 * 1024) // (6 * max_width)))
    tb = min(tb, 8192)
    if B >= 2 * align:
        tb = min(tb, -(-B // 2))
    tb = min(tb, _round_up(B, align))
    tb = max(align, (tb // align) * align)

    b_pad = _round_up(B, tb)
    if b_pad != B:
        x = jnp.pad(x, ((0, b_pad - B), (0, 0)))
    grid = (b_pad // tb,)

    # ---- specs ------------------------------------------------------------
    params = []
    in_specs = [pl.BlockSpec((tb, in_size), lambda i: (i, 0))]
    for w, b in zip(weights, biases):
        params.append(w)
        params.append(b)
        # Constant index_map -> params stay resident in VMEM across the grid.
        in_specs.append(pl.BlockSpec(w.shape, lambda i: (0, 0)))
        in_specs.append(pl.BlockSpec(b.shape, lambda i: (0, 0)))

    # NOTE: total_out can be far below 128 lanes (masked stores).  Padding the
    # output to 128 lanes trades 16x writeback bytes for unmasked stores at
    # total_out=8 -- gate that on a profile; keep lane-exact output here.
    out_shape = jax.ShapeDtypeStruct((b_pad, total_out), jnp.float32)
    out_specs = pl.BlockSpec((tb, total_out), lambda i: (i, 0))

    # ---- VMEM budget -------------------------------------------------------
    param_bytes = sum(int(p.size) * p.dtype.itemsize for p in params)
    x_tile_bytes = tb * in_size * x.dtype.itemsize
    out_tile_bytes = tb * total_out * 4
    act_bytes = tb * max_width * 6  # f32 h + bf16 MXU operand copy
    vmem_needed = param_bytes + 2 * (x_tile_bytes + out_tile_bytes) + act_bytes
    resident_budget = 48 * 1024 * 1024  # headroom within v7x's 64 MiB VMEM
    if vmem_needed > resident_budget:
        # TODO(synk): K-tiled reduction grid axis for params beyond the
        # resident-VMEM budget.
        raise ValueError(
            "parameter set exceeds resident-VMEM budget; K-tiling not "
            "implemented"
        )
    vmem_limit = min(
        resident_budget,
        max(int(vmem_needed * 1.25) + (1 << 20), 32 * 1024 * 1024),
    )

    # ---- cost estimate -----------------------------------------------------
    flops = 2 * b_pad * sum(int(w.shape[0]) * int(w.shape[1]) for w in weights)
    transcendentals = b_pad * total_out if output == "softmax" else 0
    bytes_accessed = (
        int(x.size) * x.dtype.itemsize
        + sum(int(p.size) * p.dtype.itemsize for p in params)
        + b_pad * total_out * 4
    )

    kernel = _make_dnn_kernel(n_layers, output, out_sizes, total_out)

    out = pl.pallas_call(
        kernel,
        grid=grid,
        out_shape=out_shape,
        in_specs=in_specs,
        out_specs=out_specs,
        compiler_params=pltpu.CompilerParams(
            dimension_semantics=("parallel",),
            vmem_limit_bytes=vmem_limit,
        ),
        cost_estimate=pl.CostEstimate(
            flops=flops,
            transcendentals=transcendentals,
            bytes_accessed=bytes_accessed,
        ),
    )(x, *params)

    out = out[:B]
    if output == "linear":
        return out[0] if squeeze else out

    # Split the single lane-dense output into per-head arrays (wrapper side).
    outs = []
    off = 0
    for sz in out_sizes:
        seg = out[:, off:off + sz]
        outs.append(seg[0] if squeeze else seg)
        off += sz
    return outs


def dnn_ref(x, weights, biases, *, output, out_sizes):
    """Pure-JAX reference of DNN.forward for correctness checking."""
    h = jnp.asarray(x).astype(jnp.float32)
    for i, (w, b) in enumerate(zip(weights, biases)):
        h = h @ w.astype(jnp.float32) + b.astype(jnp.float32)
        if i < len(weights) - 1:
            h = jnp.maximum(h, 0.0)
    if output == "linear":
        return h
    outs, off = [], 0
    for sz in out_sizes:
        outs.append(jax.nn.softmax(h[:, off:off + sz], axis=-1))
        off += sz
    return outs


def init_dnn_params(key, in_size, hidden, out_sizes):
    """Deterministic init mimicking nn.Linear (uniform +-1/sqrt(fan_in))."""
    dims = [in_size] + list(hidden) + [sum(out_sizes)]
    weights, biases = [], []
    for i in range(len(dims) - 1):
        key, kw, kb = jax.random.split(key, 3)
        bound = 1.0 / jnp.sqrt(dims[i])
        w = jax.random.uniform(
            kw, (dims[i], dims[i + 1]), jnp.float32, minval=-bound, maxval=bound
        )
        b = jax.random.uniform(
            kb, (1, dims[i + 1]), jnp.float32, minval=-bound, maxval=bound
        )
        weights.append(w)
        biases.append(b)
    return weights, biases


if __name__ == "__main__":
    # Config consistent with the module:
    #   DNN(in_size=16, out_sizes=[4, 4], output='softmax', hidden=[32, 32])
    in_size = 16
    hidden = [32, 32]
    out_sizes = [4, 4]
    batch = 8

    key = jax.random.PRNGKey(0)
    key, kx = jax.random.split(key)
    x = jax.random.normal(kx, (batch, in_size), dtype=jnp.float32)

    weights, biases = init_dnn_params(key, in_size, hidden, out_sizes)

    # --- softmax head (list of per-segment probabilities) ---
    probs = dnn_forward(x, weights, biases, output="softmax", out_sizes=out_sizes)
    probs = jax.block_until_ready(probs)
    probs_ref = dnn_ref(x, weights, biases, output="softmax", out_sizes=out_sizes)
    for p, pr, sz in zip(probs, probs_ref, out_sizes):
        assert p.shape == (batch, sz)
        assert jnp.allclose(jnp.sum(p, axis=-1), 1.0, atol=1e-2)
        assert jnp.allclose(p, pr, atol=5e-3), "softmax mismatch vs reference"

    # --- linear head (single [B, total_out] logits array) ---
    logits = dnn_forward(x, weights, biases, output="linear", out_sizes=out_sizes)
    logits = jax.block_until_ready(logits)
    logits_ref = dnn_ref(x, weights, biases, output="linear", out_sizes=out_sizes)
    assert logits.shape == (batch, sum(out_sizes))
    assert jnp.allclose(logits, logits_ref, atol=1e-4), "linear mismatch"

    # --- bf16-weight variant (bf16 x + weights on the MXU, f32 accumulate) ---
    w_bf16 = [w.astype(jnp.bfloat16) for w in weights]
    probs_bf16 = dnn_forward(
        x, w_bf16, biases, output="softmax", out_sizes=out_sizes
    )
    probs_bf16 = jax.block_until_ready(probs_bf16)
    for p16, pr in zip(probs_bf16, probs_ref):
        assert jnp.allclose(p16, pr, atol=5e-2), "bf16 softmax mismatch"

    # --- larger, non-multiple-of-tile batch to exercise tile selection ---
    key, kx2 = jax.random.split(key)
    x_big = jax.random.normal(kx2, (600, in_size), dtype=jnp.float32)
    logits_big = dnn_forward(
        x_big, weights, biases, output="linear", out_sizes=out_sizes
    )
    logits_big = jax.block_until_ready(logits_big)
    logits_big_ref = dnn_ref(
        x_big, weights, biases, output="linear", out_sizes=out_sizes
    )
    assert logits_big.shape == (600, sum(out_sizes))
    assert jnp.allclose(logits_big, logits_big_ref, atol=1e-4), "big-batch mismatch"

    print("KERNEL_OK")
</pallas_src>

<mosaic_0001>
module attributes {stable_mosaic.version = 11 : i64} {
  func.func @kernel(%arg0: i32, %arg1: memref<8x16xf32, #tpu.memory_space<vmem>>, %arg2: memref<16x32xf32, #tpu.memory_space<vmem>>, %arg3: memref<1x32xf32, #tpu.memory_space<vmem>>, %arg4: memref<32x32xf32, #tpu.memory_space<vmem>>, %arg5: memref<1x32xf32, #tpu.memory_space<vmem>>, %arg6: memref<32x8xf32, #tpu.memory_space<vmem>>, %arg7: memref<1x8xf32, #tpu.memory_space<vmem>>, %arg8: memref<8x8xf32, #tpu.memory_space<vmem>>) attributes {dimension_semantics = [#tpu.dimension_semantics<parallel>], iteration_bounds = array<i64: 1>, scalar_prefetch = 0 : i64, scratch_operands = 0 : i64, tpu.core_type = #tpu.core_type<tc>, window_params = [{transform_indices = @transform_0, window_bounds = array<i64: 8, 16>}, {pipeline_mode = #tpu.pipeline_mode<synchronous>, transform_indices = @transform_1, window_bounds = array<i64: 16, 32>}, {pipeline_mode = #tpu.pipeline_mode<synchronous>, transform_indices = @transform_2, window_bounds = array<i64: 1, 32>}, {pipeline_mode = #tpu.pipeline_mode<synchronous>, transform_indices = @transform_3, window_bounds = array<i64: 32, 32>}, {pipeline_mode = #tpu.pipeline_mode<synchronous>, transform_indices = @transform_4, window_bounds = array<i64: 1, 32>}, {pipeline_mode = #tpu.pipeline_mode<synchronous>, transform_indices = @transform_5, window_bounds = array<i64: 32, 8>}, {pipeline_mode = #tpu.pipeline_mode<synchronous>, transform_indices = @transform_6, window_bounds = array<i64: 1, 8>}, {transform_indices = @transform_7, window_bounds = array<i64: 8, 8>}]} {
    %c0 = arith.constant 0 : index
    %c0_0 = arith.constant 0 : index
    %0 = vector.load %arg1[%c0, %c0_0] : memref<8x16xf32, #tpu.memory_space<vmem>>, vector<8x16xf32>
    %c0_1 = arith.constant 0 : index
    %c0_2 = arith.constant 0 : index
    %1 = vector.load %arg2[%c0_1, %c0_2] : memref<16x32xf32, #tpu.memory_space<vmem>>, vector<16x32xf32>
    %c0_3 = arith.constant 0 : index
    %c0_4 = arith.constant 0 : index
    %2 = vector.load %arg3[%c0_3, %c0_4] : memref<1x32xf32, #tpu.memory_space<vmem>>, vector<1x32xf32>
    %cst = arith.constant dense<0.000000e+00> : vector<8x32xf32>
    %3 = tpu.matmul %0, %1, %cst {dimension_numbers = #tpu.dot_dimension_numbers<[1], [0], [0], [1], [0, 0, 1, 1], [], []>} : vector<8x16xf32>, vector<16x32xf32>, vector<8x32xf32> -> vector<8x32xf32>
    %4 = vector.broadcast %2 : vector<1x32xf32> to vector<8x32xf32>
    %5 = arith.addf %3, %4 : vector<8x32xf32>
    %cst_5 = arith.constant 0.000000e+00 : f32
    %6 = vector.broadcast %cst_5 : f32 to vector<8x32xf32>
    %7 = arith.maximumf %5, %6 : vector<8x32xf32>
    %c0_6 = arith.constant 0 : index
    %c0_7 = arith.constant 0 : index
    %8 = vector.load %arg4[%c0_6, %c0_7] : memref<32x32xf32, #tpu.memory_space<vmem>>, vector<32x32xf32>
    %c0_8 = arith.constant 0 : index
    %c0_9 = arith.constant 0 : index
    %9 = vector.load %arg5[%c0_8, %c0_9] : memref<1x32xf32, #tpu.memory_space<vmem>>, vector<1x32xf32>
    %cst_10 = arith.constant dense<0.000000e+00> : vector<8x32xf32>
    %10 = tpu.matmul %7, %8, %cst_10 {dimension_numbers = #tpu.dot_dimension_numbers<[1], [0], [0], [1], [0, 0, 1, 1], [], []>} : vector<8x32xf32>, vector<32x32xf32>, vector<8x32xf32> -> vector<8x32xf32>
    %11 = vector.broadcast %9 : vector<1x32xf32> to vector<8x32xf32>
    %12 = arith.addf %10, %11 : vector<8x32xf32>
    %cst_11 = arith.constant 0.000000e+00 : f32
    %13 = vector.broadcast %cst_11 : f32 to vector<8x32xf32>
    %14 = arith.maximumf %12, %13 : vector<8x32xf32>
    %c0_12 = arith.constant 0 : index
    %c0_13 = arith.constant 0 : index
    %15 = vector.load %arg6[%c0_12, %c0_13] : memref<32x8xf32, #tpu.memory_space<vmem>>, vector<32x8xf32>
    %c0_14 = arith.constant 0 : index
    %c0_15 = arith.constant 0 : index
    %16 = vector.load %arg7[%c0_14, %c0_15] : memref<1x8xf32, #tpu.memory_space<vmem>>, vector<1x8xf32>
    %cst_16 = arith.constant dense<0.000000e+00> : vector<8x8xf32>
    %17 = tpu.matmul %14, %15, %cst_16 {dimension_numbers = #tpu.dot_dimension_numbers<[1], [0], [0], [1], [0, 0, 1, 1], [], []>} : vector<8x32xf32>, vector<32x8xf32>, vector<8x8xf32> -> vector<8x8xf32>
    %18 = vector.broadcast %16 : vector<1x8xf32> to vector<8x8xf32>
    %19 = arith.addf %17, %18 : vector<8x8xf32>
    %20 = tpu.iota {dimensions = array<i32: 1>} : vector<1x8xi32>
    %cst_17 = arith.constant 0.000000e+00 : f32
    %21 = vector.broadcast %cst_17 : f32 to vector<8x8xf32>
    %c0_i32 = arith.constant 0 : i32
    %22 = vector.broadcast %c0_i32 : i32 to vector<1x8xi32>
    %23 = arith.cmpi sge, %20, %22 : vector<1x8xi32>
    %c4_i32 = arith.constant 4 : i32
    %24 = vector.broadcast %c4_i32 : i32 to vector<1x8xi32>
    %25 = arith.cmpi slt, %20, %24 : vector<1x8xi32>
    %26 = arith.andi %23, %25 : vector<1x8xi1>
    %cst_18 = arith.constant 0xFF800000 : f32
    %27 = vector.shape_cast %26 : vector<1x8xi1> to vector<1x8xi1>
    %28 = vector.broadcast %27 : vector<1x8xi1> to vector<8x8xi1>
    %29 = vector.broadcast %cst_18 : f32 to vector<8x8xf32>
    %30 = arith.select %28, %19, %29 : vector<8x8xi1>, vector<8x8xf32>
    %cst_19 = arith.constant dense<0xFF800000> : vector<8xf32>
    %31 = vector.multi_reduction <maximumf>, %30, %cst_19 [1] : vector<8x8xf32> to vector<8xf32>
    %32 = vector.shape_cast %31 : vector<8xf32> to vector<8x1xf32>
    %cst_20 = arith.constant 0.000000e+00 : f32
    %33 = vector.shape_cast %26 : vector<1x8xi1> to vector<1x8xi1>
    %34 = vector.broadcast %33 : vector<1x8xi1> to vector<8x8xi1>
    %35 = vector.shape_cast %32 : vector<8x1xf32> to vector<8x1xf32>
    %36 = vector.broadcast %35 : vector<8x1xf32> to vector<8x8xf32>
    %37 = vector.broadcast %cst_20 : f32 to vector<8x8xf32>
    %38 = arith.select %34, %36, %37 : vector<8x8xi1>, vector<8x8xf32>
    %39 = arith.addf %21, %38 : vector<8x8xf32>
    %c4_i32_21 = arith.constant 4 : i32
    %40 = vector.broadcast %c4_i32_21 : i32 to vector<1x8xi32>
    %41 = arith.cmpi sge, %20, %40 : vector<1x8xi32>
    %c8_i32 = arith.constant 8 : i32
    %42 = vector.broadcast %c8_i32 : i32 to vector<1x8xi32>
    %43 = arith.cmpi slt, %20, %42 : vector<1x8xi32>
    %44 = arith.andi %41, %43 : vector<1x8xi1>
    %cst_22 = arith.constant 0xFF800000 : f32
    %45 = vector.shape_cast %44 : vector<1x8xi1> to vector<1x8xi1>
    %46 = vector.broadcast %45 : vector<1x8xi1> to vector<8x8xi1>
    %47 = vector.broadcast %cst_22 : f32 to vector<8x8xf32>
    %48 = arith.select %46, %19, %47 : vector<8x8xi1>, vector<8x8xf32>
    %cst_23 = arith.constant dense<0xFF800000> : vector<8xf32>
    %49 = vector.multi_reduction <maximumf>, %48, %cst_23 [1] : vector<8x8xf32> to vector<8xf32>
    %50 = vector.shape_cast %49 : vector<8xf32> to vector<8x1xf32>
    %cst_24 = arith.constant 0.000000e+00 : f32
    %51 = vector.shape_cast %44 : vector<1x8xi1> to vector<1x8xi1>
    %52 = vector.broadcast %51 : vector<1x8xi1> to vector<8x8xi1>
    %53 = vector.shape_cast %50 : vector<8x1xf32> to vector<8x1xf32>
    %54 = vector.broadcast %53 : vector<8x1xf32> to vector<8x8xf32>
    %55 = vector.broadcast %cst_24 : f32 to vector<8x8xf32>
    %56 = arith.select %52, %54, %55 : vector<8x8xi1>, vector<8x8xf32>
    %57 = arith.addf %39, %56 : vector<8x8xf32>
    %58 = arith.subf %19, %57 : vector<8x8xf32>
    %59 = math.exp %58 : vector<8x8xf32>
    %cst_25 = arith.constant 0.000000e+00 : f32
    %60 = vector.broadcast %cst_25 : f32 to vector<8x8xf32>
    %cst_26 = arith.constant 0.000000e+00 : f32
    %61 = vector.shape_cast %26 : vector<1x8xi1> to vector<1x8xi1>
    %62 = vector.broadcast %61 : vector<1x8xi1> to vector<8x8xi1>
    %63 = vector.broadcast %cst_26 : f32 to vector<8x8xf32>
    %64 = arith.select %62, %59, %63 : vector<8x8xi1>, vector<8x8xf32>
    %cst_27 = arith.constant dense<0.000000e+00> : vector<8xf32>
    %65 = vector.multi_reduction <add>, %64, %cst_27 [1] : vector<8x8xf32> to vector<8xf32>
    %66 = vector.shape_cast %65 : vector<8xf32> to vector<8x1xf32>
    %cst_28 = arith.constant 0.000000e+00 : f32
    %67 = vector.shape_cast %26 : vector<1x8xi1> to vector<1x8xi1>
    %68 = vector.broadcast %67 : vector<1x8xi1> to vector<8x8xi1>
    %69 = vector.shape_cast %66 : vector<8x1xf32> to vector<8x1xf32>
    %70 = vector.broadcast %69 : vector<8x1xf32> to vector<8x8xf32>
    %71 = vector.broadcast %cst_28 : f32 to vector<8x8xf32>
    %72 = arith.select %68, %70, %71 : vector<8x8xi1>, vector<8x8xf32>
    %73 = arith.addf %60, %72 : vector<8x8xf32>
    %cst_29 = arith.constant 0.000000e+00 : f32
    %74 = vector.shape_cast %44 : vector<1x8xi1> to vector<1x8xi1>
    %75 = vector.broadcast %74 : vector<1x8xi1> to vector<8x8xi1>
    %76 = vector.broadcast %cst_29 : f32 to vector<8x8xf32>
    %77 = arith.select %75, %59, %76 : vector<8x8xi1>, vector<8x8xf32>
    %cst_30 = arith.constant dense<0.000000e+00> : vector<8xf32>
    %78 = vector.multi_reduction <add>, %77, %cst_30 [1] : vector<8x8xf32> to vector<8xf32>
    %79 = vector.shape_cast %78 : vector<8xf32> to vector<8x1xf32>
    %cst_31 = arith.constant 0.000000e+00 : f32
    %80 = vector.shape_cast %44 : vector<1x8xi1> to vector<1x8xi1>
    %81 = vector.broadcast %80 : vector<1x8xi1> to vector<8x8xi1>
    %82 = vector.shape_cast %79 : vector<8x1xf32> to vector<8x1xf32>
    %83 = vector.broadcast %82 : vector<8x1xf32> to vector<8x8xf32>
    %84 = vector.broadcast %cst_31 : f32 to vector<8x8xf32>
    %85 = arith.select %81, %83, %84 : vector<8x8xi1>, vector<8x8xf32>
    %86 = arith.addf %73, %85 : vector<8x8xf32>
    %87 = tpu.reciprocal %86 {approx = true} : vector<8x8xf32> -> vector<8x8xf32>
    %88 = arith.mulf %59, %87 : vector<8x8xf32>
    %c0_32 = arith.constant 0 : index
    %c0_33 = arith.constant 0 : index
    %89 = vector.load %arg8[%c0_32, %c0_33] : memref<8x8xf32, #tpu.memory_space<vmem>>, vector<8x8xf32>
    tpu.vector_store %arg8[%c0_32, %c0_33], %88 {strides = array<i32>} : memref<8x8xf32, #tpu.memory_space<vmem>>, vector<8x8xf32>,
    return
  }
  func.func @transform_0(%arg0: i32) -> (i32, i32) {
    %c0_i32 = arith.constant 0 : i32
    %c0_i32_0 = arith.constant 0 : i32
    return %arg0, %c0_i32 : i32, i32
  }
  func.func @transform_1(%arg0: i32) -> (i32, i32) {
    %c0_i32 = arith.constant 0 : i32
    %c0_i32_0 = arith.constant 0 : i32
    %c0_i32_1 = arith.constant 0 : i32
    return %c0_i32, %c0_i32_0 : i32, i32
  }
  func.func @transform_2(%arg0: i32) -> (i32, i32) {
    %c0_i32 = arith.constant 0 : i32
    %c0_i32_0 = arith.constant 0 : i32
    %c0_i32_1 = arith.constant 0 : i32
    return %c0_i32, %c0_i32_0 : i32, i32
  }
  func.func @transform_3(%arg0: i32) -> (i32, i32) {
    %c0_i32 = arith.constant 0 : i32
    %c0_i32_0 = arith.constant 0 : i32
    %c0_i32_1 = arith.constant 0 : i32
    return %c0_i32, %c0_i32_0 : i32, i32
  }
  func.func @transform_4(%arg0: i32) -> (i32, i32) {
    %c0_i32 = arith.constant 0 : i32
    %c0_i32_0 = arith.constant 0 : i32
    %c0_i32_1 = arith.constant 0 : i32
    return %c0_i32, %c0_i32_0 : i32, i32
  }
  func.func @transform_5(%arg0: i32) -> (i32, i32) {
    %c0_i32 = arith.constant 0 : i32
    %c0_i32_0 = arith.constant 0 : i32
    %c0_i32_1 = arith.constant 0 : i32
    return %c0_i32, %c0_i32_0 : i32, i32
  }
  func.func @transform_6(%arg0: i32) -> (i32, i32) {
    %c0_i32 = arith.constant 0 : i32
    %c0_i32_0 = arith.constant 0 : i32
    %c0_i32_1 = arith.constant 0 : i32
    return %c0_i32, %c0_i32_0 : i32, i32
  }
  func.func @transform_7(%arg0: i32) -> (i32, i32) {
    %c0_i32 = arith.constant 0 : i32
    %c0_i32_0 = arith.constant 0 : i32
    return %arg0, %c0_i32 : i32, i32
  }
}

</mosaic_0001>

<bundles_post_ra>
// kernel: tpu_custom_call.1
= control target key start
LH: loop header
LB: loop body
LE: loop exit
PB: predicated region body
PF: predicated region fallthrough
CT: control target
= control target key end

     0   :  { %12 = vsyncpa [#allocation3], 0  ;;  %s372_s0 = inlined_call_operand.vmem [shape: f32[8,16], index: 0, kind: input, shape index: {}]   ;;  %s373_s1 = inlined_call_operand.hbm [shape: f32[16,32], index: 1, kind: input, shape index: {}]   ;;  %s374_s2 = inlined_call_operand.vmem [shape: f32[1,32], index: 2, kind: input, shape index: {}]   ;;  %s375_s3 = inlined_call_operand.vmem [shape: f32[32,32], index: 3, kind: input, shape index: {}]   ;;  %s376_s4 = inlined_call_operand.vmem [shape: f32[1,32], index: 4, kind: input, shape index: {}]   ;;  %s377_s5 = inlined_call_operand.vmem [shape: f32[32,8], index: 5, kind: input, shape index: {}]   ;;  %s378_s6 = inlined_call_operand.vmem [shape: f32[1,8], index: 6, kind: input, shape index: {}]   ;;  %s379_s7 = inlined_call_operand.hbm [shape: f32[8,8], index: 7, kind: output, shape index: {}]  }
   0x1   :  { %13 = vsyncpa [#allocation4], 0  ;;  %s20_s26 = sshll.u32 %s373_s1, 4  ;;  %s265_s27 = smov [#allocation2]   ;;  %s21_s26 = int_to_ptr.hbm [resolvable:$true] %s20_s26 }
   0x2   :  { %s22_s28 = sshll.u32 %s265_s27, 4  ;;  %s266_s29 = smov 128   ;;  %s23_s28 = int_to_ptr.vmem [resolvable:$true] %s22_s28 }
   0x3   :  { %s267_s30 = smov 8  }
   0x4   :  { %28 = dma.hbm_to_vmem [thread:$0]  %s21_s26, 256, %s23_s28, [#allocation3], %s266_s29, %s266_s29, %s267_s30  }
   0x5   :  { %261 = dma.done.wait [#allocation3], 256  }
   0x6   :  { %262 = vsyncadd [#allocation3], 4294967040  ;;  %v45_v0 = vld [vmem:[#allocation2 + $0x8] sm:$0xff]  ;;  %v44_v1 = vld [vmem:[#allocation2] sm:$0xff]  ;;  %vm50_vm0 = vcmask 130048   ;;  %vm83_vm1 = vcmask 261120   ;;  %v139_v19 = vlaneseq }
   0x7   :  { %68 = vmatpush.msra.mxu0 %v45_v0  ;;  %v43_v2 = vld [vmem:[%s372_s0] sm:$0xff]  ;;  %v78_v3 = vld [vmem:[%s375_s3 + $0x18] sm:$0xff]  ;;  %v77_v4 = vld [vmem:[%s375_s3 + $0x10] sm:$0xff]  ;;  %vm147_vm3 = vcmask 64512   ;;  %s189_s29 = sshll.u32 %s379_s7, 4  ;;  %s190_s29 = int_to_ptr.hbm [resolvable:$true] %s189_s29 }
   0x8   :  { %99 = vmatpush.msra.mxu1 %v78_v3  ;;  %v76_v5 = vld [vmem:[%s375_s3 + $0x8] sm:$0xff]  ;;  %v75_v6 = vld [vmem:[%s375_s3] sm:$0xff]  ;;  %v111_v7 = vld [vmem:[%s377_s5 + $0x18] sm:$0xff]  ;;  %v140_v20 = vand.u32 127, %v139_v19 }
   0x9   :  { %69 = vmatpush.msra.mxu0 %v44_v1  ;;  %131 = vmatpush.msra.mxu2 %v111_v7  ;;  %v206_v8 = vld [vmem:[%s374_s2] ss:$0 sm:$0xff]  ;;  %v110_v12 = vld [vmem:[%s377_s5 + $0x10] sm:$0xff]  ;;  %v109_v13 = vld [vmem:[%s377_s5 + $0x8] sm:$0xff] }
   0xa   :  { %199 = vmatmul.msk.f32.vlgmr.msra.gmra.mxu0 %vm50_vm0, %v43_v2  ;;  %100 = vmatpush.msra.mxu1 %v77_v4  ;;  %v108_v14 = vld [vmem:[%s377_s5] sm:$0xff]  ;;  %vm142_vm2 = vcmp.lt.s32.totalorder %v140_v20, 4  ;;  %vm153_vm4 = vcmp.ge.s32.totalorder %v140_v20, 4  ;;  %vm154_vm5 = vcmp.lt.s32.totalorder %v140_v20, 8 }
   0xb   :  { %132 = vmatpush.msra.mxu2 %v110_v12  ;;  %v207_v15 = vld [vmem:[%s376_s4] ss:$0 sm:$0xff]  ;;  %vm350_vm6 = vmand %vm153_vm4, %vm154_vm5  ;;  %s268_s4 = smov [#allocation5]  }
   0xc   :  { %101 = vmatpush.msra.mxu1 %v76_v5  ;;  %v208_v21 = vld [vmem:[%s378_s6] ss:$0 sm:$0xff]  ;;  %s187_s5 = sshll.u32 %s268_s4, 4  ;;  %s188_s5 = int_to_ptr.vmem [resolvable:$true] %s187_s5 }
   0xd   :  { %133 = vmatpush.msra.mxu2 %v109_v13 }
   0xe   :  { %102 = vmatpush.msra.mxu1 %v75_v6 }
   0xf   :  { %134 = vmatpush.msra.mxu2 %v108_v14 }
  0x87   :  { %v71_v9 = vpop.f32.mrf.mxu0 }
  0x88   :  { %v72_v10 = vadd.f32 %v206_v8, %v71_v9 }
  0x8a   :  { %v74_v11 = vmax.f32 %v72_v10, 0.0 }
  0x8c   :  { %200 = vmatmul.msk.f32.vlgmr.msra.gmra.mxu1 %vm83_vm1, %v74_v11 }
 0x109   :  { %v104_v16 = vpop.f32.mrf.mxu1 }
 0x10a   :  { %v105_v17 = vadd.f32 %v207_v15, %v104_v16 }
 0x10c   :  { %v107_v18 = vmax.f32 %v105_v17, 0.0 }
 0x10e   :  { %201 = vmatmul.msk.f32.vlgmr.msra.gmra.mxu2 %vm83_vm1, %v107_v18 }
 0x191   :  { %v136_v22 = vpop.f32.mrf.mxu2 }
 0x192   :  { %v137_v23 = vadd.f32 %v208_v21, %v136_v22 }
 0x194   :  { %v146_v24 = vsel %vm142_vm2, %v137_v23, -inf  ;;  %v158_v27 = vsel %vm350_vm6, %v137_v23, -inf }
 0x195   :  { %v148_v25 = vsel %vm147_vm3, %v146_v24, -inf  ;;  %v159_v28 = vsel %vm147_vm3, %v158_v27, -inf }
 0x196   :  { %149 = vmax.xlane.f32.xlu0 %v148_v25 }
 0x19e   :  { %160 = vmax.xlane.f32.xlu0 %v159_v28 }
 0x209   :  { %v150_v29 = vpop.xlane.xlu0 %149 }
 0x20a   :  { %v151_v31 = vsel %vm142_vm2, %v150_v29, 0.0 }
 0x211   :  { %v161_v30 = vpop.xlane.xlu0 %160 }
 0x212   :  { %v162_v32 = vsel %vm350_vm6, %v161_v30, 0.0 }
 0x213   :  { %v163_v33 = vadd.f32 %v162_v32, %v151_v31 }
 0x215   :  { %v164_v34 = vsub.f32 %v137_v23, %v163_v33 }
 0x217   :  { %v165_v35 = vmul.f32 1.442695, %v164_v34 }
 0x219   :  { %209 = vpow2.f32 %v165_v35 }
 0x21f   :  { %v210_v36 = vpop.eup %209 }
 0x220   :  { %v167_v37 = vsel %vm142_vm2, %v210_v36, 0.0  ;;  %v173_v39 = vsel %vm350_vm6, %v210_v36, 0.0 }
 0x221   :  { %v168_v38 = vsel %vm147_vm3, %v167_v37, 0.0  ;;  %v174_v40 = vsel %vm147_vm3, %v173_v39, 0.0 }
 0x222   :  { %169 = vadd.xlane.f32.xlu1 %v168_v38 }
 0x22a   :  { %175 = vadd.xlane.f32.xlu1 %v174_v40 }
 0x295   :  { %v170_v41 = vpop.xlane.xlu1 %169 }
 0x296   :  { %v171_v43 = vsel %vm142_vm2, %v170_v41, 0.0 }
 0x29d   :  { %v176_v42 = vpop.xlane.xlu1 %175 }
 0x29e   :  { %v177_v44 = vsel %vm350_vm6, %v176_v42, 0.0 }
 0x29f   :  { %v178_v45 = vadd.f32 %v177_v44, %v171_v43 }
 0x2a1   :  { %211 = vrcp.f32 %v178_v45 }
 0x2a7   :  { %v212_v46 = vpop.eup %211 }
 0x2a8   :  { %v180_v47 = vmul.f32 %v212_v46, %v210_v36 }
 0x2aa   :  { %181 = vst.msk [vmem:[#allocation5] sm:$0xff] %vm147_vm3, %v180_v47 }
 0x2ab   :  { %192 = dma.vmem_to_hbm [thread:$0]  %s188_s5, 128, %s190_s29, [#allocation4]  }
 0x2ac   :  { %263 = dma.done.wait [#allocation4], 128  }
 0x2ad   :  { %264 = vsyncadd [#allocation4], 4294967168 }
 0x2ae   :  { %197 = vsyncpa [#allocation3], 1 }
 0x2af   :  { %198 = vsyncpa [#allocation4], 1 }

</bundles_post_ra>
